<compile_context>
chip_gen: v7x
topology: tpu7x:2x2x1
jax: 0.10.0
libtpu: 0.0.40
codegen_flags: <defaults>
</compile_context>

<pallas_src>
import functools

import jax
import jax.numpy as jnp
from jax.experimental import pallas as pl
from jax.experimental.pallas import tpu as pltpu


def _round_up(x, m):
    return (x + m - 1) // m * m


# -----------------------------------------------------------------------------
# Fused AttentionBlock kernel (one batch tile per grid step)
# -----------------------------------------------------------------------------
def _attention_kernel(x_ref, wgtp_ref, bgtp_ref, ww_ref, bw_ref, o_ref, *,
                      d_valid, dj, dp):
    """x_ref:(tm,C) f32, wgtp_ref:(C,3*Dp) bf16, bgtp_ref:(1,3*Dp) f32,
    ww_ref:(Dp,C) bf16, bw_ref:(1,C) f32, o_ref:(tm,C) f32."""
    x = x_ref[...]                                      # (tm, C) f32 (residual)
    xb = x.astype(jnp.bfloat16)

    # g / theta / phi projections in a single bf16 MXU matmul (shared K = C).
    proj = jnp.dot(xb, wgtp_ref[...],
                   preferred_element_type=jnp.float32) + bgtp_ref[...]
    # j (softmax) axis only needs Dj = round_up(D, 8) entries; i (lane) axis
    # keeps the lane-padded Dp so the second matmul / stores stay lane-dense.
    g_j = proj[:, 0 * dp:0 * dp + dj]                   # (tm, Dj)
    theta = proj[:, 1 * dp:1 * dp + dj]                 # (tm, Dj)
    phi = proj[:, 2 * dp:3 * dp]                        # (tm, Dp)

    # f[b, j, i] = theta[b, j] * phi[b, i]  (j on sublanes, i on lanes)
    f = theta[:, :, None] * phi[:, None, :]             # (tm, Dj, Dp) f32
    if dj > d_valid:
        # Mask only the Dj-D padded j rows; mask varies along j only.
        j_ids = jax.lax.broadcasted_iota(jnp.int32, (1, dj, 1), 1)
        f = jnp.where(j_ids < d_valid, f, -1e30)

    # softmax over j fused with the read-out against g.
    m = jnp.max(f, axis=1, keepdims=True)               # (tm, 1, Dp)
    p = jnp.exp(f - m)
    denom = jnp.sum(p, axis=1, keepdims=True)           # (tm, 1, Dp)
    num = jnp.sum(p * g_j[:, :, None], axis=1, keepdims=True)
    y = (num * pl.reciprocal(denom, approx=True))[:, 0, :]   # (tm, Dp)

    # W(y) + residual, epilogue in f32.  Zero-padded W^T rows (>= D)
    # neutralize the padded columns of y.
    wy = jnp.dot(y.astype(jnp.bfloat16), ww_ref[...],
                 preferred_element_type=jnp.float32) + bw_ref[...]
    o_ref[...] = (wy + x).astype(o_ref.dtype)


# -----------------------------------------------------------------------------
# One-time weight preparation (hoisted out of the per-call wrapper)
# -----------------------------------------------------------------------------
def prepare_params(params, in_channels):
    C = in_channels
    D = C // 8
    Dp = _round_up(D, 128)

    wg, bg = params["g"]
    wt, bt = params["theta"]
    wph, bph = params["phi"]
    ww, bw = params["W"]

    def pad_proj_w(w):  # (D, C) torch layout -> (C, Dp): transposed + lane-padded
        return jnp.pad(w.T, ((0, 0), (0, Dp - D)))

    wgtp = jnp.concatenate(
        [pad_proj_w(wg), pad_proj_w(wt), pad_proj_w(wph)], axis=1
    ).astype(jnp.bfloat16)                                        # (C, 3*Dp)
    bgtp = jnp.concatenate(
        [jnp.pad(b, (0, Dp - D)) for b in (bg, bt, bph)]
    ).reshape(1, 3 * Dp).astype(jnp.float32)
    ww_p = jnp.pad(ww.T, ((0, Dp - D), (0, 0))).astype(jnp.bfloat16)  # (Dp, C)
    bw_p = bw.reshape(1, C).astype(jnp.float32)
    return {"wgtp": wgtp, "bgtp": bgtp, "ww": ww_p, "bw": bw_p}


# -----------------------------------------------------------------------------
# Wrapper: single pallas_call, batch-tiled, no feature-axis padding
# -----------------------------------------------------------------------------
@functools.partial(jax.jit, static_argnames=("batch_tile",))
def attention_block(x, prepared, batch_tile=128):
    B, C = x.shape
    D = C // 8
    Dj = _round_up(D, 8)
    Dp = _round_up(D, 128)

    # Batch tile: as large as requested, but multiple of 8 and, when the
    # batch allows it, giving >= 2 grid steps (so v7x's 2 TensorCores both
    # get work via the "parallel" batch axis).
    tm = min(batch_tile, _round_up(B, 8))
    tm = max(8, tm - tm % 8)
    if _round_up(B, tm) // tm < 2 and tm > 8:
        half = tm // 2
        tm = max(8, half - half % 8)
    Bp = _round_up(B, tm)

    x_in = x.astype(jnp.float32)
    if Bp != B:                                   # pad batch axis only if needed
        x_in = jnp.pad(x_in, ((0, Bp - B), (0, 0)))

    kernel = functools.partial(_attention_kernel, d_valid=D, dj=Dj, dp=Dp)
    cost = pl.CostEstimate(
        flops=2 * Bp * C * 3 * Dp + 8 * Bp * Dj * Dp + 2 * Bp * Dp * C,
        transcendentals=Bp * Dj * Dp,
        bytes_accessed=(2 * Bp * C * 4 + C * 3 * Dp * 2 + Dp * C * 2
                        + (3 * Dp + C) * 4),
    )

    out = pl.pallas_call(
        kernel,
        out_shape=jax.ShapeDtypeStruct((Bp, C), jnp.float32),
        grid=(Bp // tm,),
        in_specs=[
            pl.BlockSpec((tm, C), lambda i: (i, 0)),         # x batch tile
            pl.BlockSpec((C, 3 * Dp), lambda i: (0, 0)),     # [Wg|Wtheta|Wphi]^T
            pl.BlockSpec((1, 3 * Dp), lambda i: (0, 0)),     # [bg|btheta|bphi]
            pl.BlockSpec((Dp, C), lambda i: (0, 0)),         # W^T (zero-padded rows)
            pl.BlockSpec((1, C), lambda i: (0, 0)),          # bW
        ],
        out_specs=pl.BlockSpec((tm, C), lambda i: (i, 0)),
        compiler_params=pltpu.CompilerParams(
            dimension_semantics=("parallel",),
            vmem_limit_bytes=48 * 1024 * 1024,
        ),
        cost_estimate=cost,
    )(x_in, prepared["wgtp"], prepared["bgtp"], prepared["ww"], prepared["bw"])

    if Bp != B:
        out = out[:B]
    return out


# -----------------------------------------------------------------------------
# Deterministic parameters (PyTorch nn.Linear default init) + pure-JAX ref
# -----------------------------------------------------------------------------
def _linear_init(key, fan_in, fan_out):
    kw, kb = jax.random.split(key)
    bound = 1.0 / (fan_in ** 0.5)
    w = jax.random.uniform(kw, (fan_out, fan_in), jnp.float32, -bound, bound)
    b = jax.random.uniform(kb, (fan_out,), jnp.float32, -bound, bound)
    return w, b


def make_params(key, in_channels):
    d = in_channels // 8
    kg, kt, kp_, kw = jax.random.split(key, 4)
    return {
        "g": _linear_init(kg, in_channels, d),
        "theta": _linear_init(kt, in_channels, d),
        "phi": _linear_init(kp_, in_channels, d),
        "W": _linear_init(kw, d, in_channels),
    }


def attention_block_ref(x, params):
    wg, bg = params["g"]
    wt, bt = params["theta"]
    wph, bph = params["phi"]
    ww, bw = params["W"]
    g_x = x @ wg.T + bg                                   # (B, D)
    theta_x = x @ wt.T + bt
    phi_x = x @ wph.T + bph
    f = phi_x[:, :, None] * theta_x[:, None, :]           # (B, D, D)
    f = jax.nn.softmax(f, axis=-1)
    y = jnp.einsum("bij,bj->bi", f, g_x)                  # (B, D)
    return y @ ww.T + bw + x


# -----------------------------------------------------------------------------
if __name__ == "__main__":
    key = jax.random.PRNGKey(0)
    kp, kx = jax.random.split(key)

    B, C = 16, 64                       # in_channels must be divisible by 8
    params = make_params(kp, C)
    prepared = prepare_params(params, C)
    x = jax.random.normal(kx, (B, C), jnp.float32)

    z = attention_block(x, prepared)
    jax.block_until_ready(z)

    z_ref = attention_block_ref(x, params)
    assert z.shape == (B, C), z.shape
    assert bool(jnp.all(jnp.isfinite(z)))
    max_err = float(jnp.max(jnp.abs(z - z_ref)))
    assert jnp.allclose(z, z_ref, atol=3e-2, rtol=3e-2), max_err
    print("KERNEL_OK")
</pallas_src>

<mosaic_0001>
module attributes {stable_mosaic.version = 11 : i64} {
  func.func @_attention_kernel(%arg0: i32, %arg1: memref<8x64xf32, #tpu.memory_space<vmem>>, %arg2: memref<64x384xbf16, #tpu.memory_space<vmem>>, %arg3: memref<1x384xf32, #tpu.memory_space<vmem>>, %arg4: memref<128x64xbf16, #tpu.memory_space<vmem>>, %arg5: memref<1x64xf32, #tpu.memory_space<vmem>>, %arg6: memref<8x64xf32, #tpu.memory_space<vmem>>) attributes {dimension_semantics = [#tpu.dimension_semantics<parallel>], iteration_bounds = array<i64: 2>, scalar_prefetch = 0 : i64, scratch_operands = 0 : i64, tpu.core_type = #tpu.core_type<tc>, window_params = [{transform_indices = @transform_0, window_bounds = array<i64: 8, 64>}, {pipeline_mode = #tpu.pipeline_mode<synchronous>, transform_indices = @transform_1, window_bounds = array<i64: 64, 384>}, {pipeline_mode = #tpu.pipeline_mode<synchronous>, transform_indices = @transform_2, window_bounds = array<i64: 1, 384>}, {pipeline_mode = #tpu.pipeline_mode<synchronous>, transform_indices = @transform_3, window_bounds = array<i64: 128, 64>}, {pipeline_mode = #tpu.pipeline_mode<synchronous>, transform_indices = @transform_4, window_bounds = array<i64: 1, 64>}, {transform_indices = @transform_5, window_bounds = array<i64: 8, 64>}]} {
    %c0 = arith.constant 0 : index
    %c0_0 = arith.constant 0 : index
    %0 = vector.load %arg1[%c0, %c0_0] : memref<8x64xf32, #tpu.memory_space<vmem>>, vector<8x64xf32>
    %1 = arith.truncf %0 : vector<8x64xf32> to vector<8x64xbf16>
    %c0_1 = arith.constant 0 : index
    %c0_2 = arith.constant 0 : index
    %2 = vector.load %arg2[%c0_1, %c0_2] : memref<64x384xbf16, #tpu.memory_space<vmem>>, vector<64x384xbf16>
    %cst = arith.constant dense<0.000000e+00> : vector<8x384xf32>
    %3 = tpu.matmul %1, %2, %cst {dimension_numbers = #tpu.dot_dimension_numbers<[1], [0], [0], [1], [0, 0, 1, 1], [], []>} : vector<8x64xbf16>, vector<64x384xbf16>, vector<8x384xf32> -> vector<8x384xf32>
    %c0_3 = arith.constant 0 : index
    %c0_4 = arith.constant 0 : index
    %4 = vector.load %arg3[%c0_3, %c0_4] : memref<1x384xf32, #tpu.memory_space<vmem>>, vector<1x384xf32>
    %5 = vector.broadcast %4 : vector<1x384xf32> to vector<8x384xf32>
    %6 = arith.addf %3, %5 : vector<8x384xf32>
    %7 = vector.extract_strided_slice %6 {offsets = [0, 0], sizes = [8, 8], strides = [1, 1]} : vector<8x384xf32> to vector<8x8xf32>
    %8 = vector.extract_strided_slice %6 {offsets = [0, 128], sizes = [8, 8], strides = [1, 1]} : vector<8x384xf32> to vector<8x8xf32>
    %9 = vector.extract_strided_slice %6 {offsets = [0, 256], sizes = [8, 128], strides = [1, 1]} : vector<8x384xf32> to vector<8x128xf32>
    %10 = vector.shape_cast %8 : vector<8x8xf32> to vector<8x8x1xf32>
    %11 = vector.shape_cast %9 : vector<8x128xf32> to vector<8x1x128xf32>
    %12 = vector.broadcast %10 : vector<8x8x1xf32> to vector<8x8x128xf32>
    %13 = vector.broadcast %11 : vector<8x1x128xf32> to vector<8x8x128xf32>
    %14 = arith.mulf %12, %13 : vector<8x8x128xf32>
    %cst_5 = arith.constant dense<0xFF800000> : vector<8x128xf32>
    %15 = vector.multi_reduction <maximumf>, %14, %cst_5 [1] : vector<8x8x128xf32> to vector<8x128xf32>
    %16 = vector.shape_cast %15 : vector<8x128xf32> to vector<8x1x128xf32>
    %17 = vector.broadcast %16 : vector<8x1x128xf32> to vector<8x8x128xf32>
    %18 = arith.subf %14, %17 : vector<8x8x128xf32>
    %19 = math.exp %18 : vector<8x8x128xf32>
    %cst_6 = arith.constant dense<0.000000e+00> : vector<8x128xf32>
    %20 = vector.multi_reduction <add>, %19, %cst_6 [1] : vector<8x8x128xf32> to vector<8x128xf32>
    %21 = vector.shape_cast %20 : vector<8x128xf32> to vector<8x1x128xf32>
    %22 = vector.shape_cast %7 : vector<8x8xf32> to vector<8x8x1xf32>
    %23 = vector.broadcast %22 : vector<8x8x1xf32> to vector<8x8x128xf32>
    %24 = arith.mulf %19, %23 : vector<8x8x128xf32>
    %cst_7 = arith.constant dense<0.000000e+00> : vector<8x128xf32>
    %25 = vector.multi_reduction <add>, %24, %cst_7 [1] : vector<8x8x128xf32> to vector<8x128xf32>
    %26 = vector.shape_cast %25 : vector<8x128xf32> to vector<8x1x128xf32>
    %27 = tpu.reciprocal %21 {approx = true} : vector<8x1x128xf32> -> vector<8x1x128xf32>
    %28 = arith.mulf %26, %27 : vector<8x1x128xf32>
    %29 = vector.shape_cast %28 : vector<8x1x128xf32> to vector<8x128xf32>
    %30 = arith.truncf %29 : vector<8x128xf32> to vector<8x128xbf16>
    %c0_8 = arith.constant 0 : index
    %c0_9 = arith.constant 0 : index
    %31 = vector.load %arg4[%c0_8, %c0_9] : memref<128x64xbf16, #tpu.memory_space<vmem>>, vector<128x64xbf16>
    %cst_10 = arith.constant dense<0.000000e+00> : vector<8x64xf32>
    %32 = tpu.matmul %30, %31, %cst_10 {dimension_numbers = #tpu.dot_dimension_numbers<[1], [0], [0], [1], [0, 0, 1, 1], [], []>} : vector<8x128xbf16>, vector<128x64xbf16>, vector<8x64xf32> -> vector<8x64xf32>
    %c0_11 = arith.constant 0 : index
    %c0_12 = arith.constant 0 : index
    %33 = vector.load %arg5[%c0_11, %c0_12] : memref<1x64xf32, #tpu.memory_space<vmem>>, vector<1x64xf32>
    %34 = vector.broadcast %33 : vector<1x64xf32> to vector<8x64xf32>
    %35 = arith.addf %32, %34 : vector<8x64xf32>
    %36 = arith.addf %35, %0 : vector<8x64xf32>
    %c0_13 = arith.constant 0 : index
    %c0_14 = arith.constant 0 : index
    %37 = vector.load %arg6[%c0_13, %c0_14] : memref<8x64xf32, #tpu.memory_space<vmem>>, vector<8x64xf32>
    tpu.vector_store %arg6[%c0_13, %c0_14], %36 {strides = array<i32>} : memref<8x64xf32, #tpu.memory_space<vmem>>, vector<8x64xf32>,
    return
  }
  func.func @transform_0(%arg0: i32) -> (i32, i32) {
    %c0_i32 = arith.constant 0 : i32
    %c0_i32_0 = arith.constant 0 : i32
    return %arg0, %c0_i32 : i32, i32
  }
  func.func @transform_1(%arg0: i32) -> (i32, i32) {
    %c0_i32 = arith.constant 0 : i32
    %c0_i32_0 = arith.constant 0 : i32
    %c0_i32_1 = arith.constant 0 : i32
    return %c0_i32, %c0_i32_0 : i32, i32
  }
  func.func @transform_2(%arg0: i32) -> (i32, i32) {
    %c0_i32 = arith.constant 0 : i32
    %c0_i32_0 = arith.constant 0 : i32
    %c0_i32_1 = arith.constant 0 : i32
    return %c0_i32, %c0_i32_0 : i32, i32
  }
  func.func @transform_3(%arg0: i32) -> (i32, i32) {
    %c0_i32 = arith.constant 0 : i32
    %c0_i32_0 = arith.constant 0 : i32
    %c0_i32_1 = arith.constant 0 : i32
    return %c0_i32, %c0_i32_0 : i32, i32
  }
  func.func @transform_4(%arg0: i32) -> (i32, i32) {
    %c0_i32 = arith.constant 0 : i32
    %c0_i32_0 = arith.constant 0 : i32
    %c0_i32_1 = arith.constant 0 : i32
    return %c0_i32, %c0_i32_0 : i32, i32
  }
  func.func @transform_5(%arg0: i32) -> (i32, i32) {
    %c0_i32 = arith.constant 0 : i32
    %c0_i32_0 = arith.constant 0 : i32
    return %arg0, %c0_i32 : i32, i32
  }
}

</mosaic_0001>

<bundles_post_ra>
// kernel: attention_block.1
= control target key start
LH: loop header
LB: loop body
LE: loop exit
PB: predicated region body
PF: predicated region fallthrough
CT: control target
= control target key end

     0   :  { %10 = vsyncpa [#allocation3], 0  ;;  %s1678_s0 = inlined_call_operand.hbm [shape: f32[16,64], index: 0, kind: input, shape index: {}]   ;;  %s1679_s1 = inlined_call_operand.vmem [shape: bf16[64,384], index: 1, kind: input, shape index: {}]   ;;  %s1680_s2 = inlined_call_operand.vmem [shape: f32[1,384], index: 2, kind: input, shape index: {}]   ;;  %s1681_s3 = inlined_call_operand.vmem [shape: bf16[128,64], index: 3, kind: input, shape index: {}]   ;;  %s1682_s4 = inlined_call_operand.vmem [shape: f32[1,64], index: 4, kind: input, shape index: {}]   ;;  %s1683_s5 = inlined_call_operand.hbm [shape: f32[16,64], index: 5, kind: output, shape index: {}]  }
   0x1   :  { %12 = vsyncpa [#allocation3 + $0x1], 0 }
   0x2   :  { %13 = vsyncpa [#allocation4], 0 }
   0x3   :  { %15 = vsyncpa [#allocation4 + $0x1], 0  ;;  %s1385_s18 = smov 0   ;;  %s1387_s19 = smov 0  }
   0x4   :  { %s1389_s20 = smov 0   ;;  %s1391_s21 = smov 0  }
   0x5 LB: > { %s1406_s22 = sadd.s32 4294967295, %s1347_s21   ;;  %s1064_s23 = sadd.s32 4294967294, %s1347_s21   ;;  %s1347_s21 = sphi %s1391_s21, %s1698_s21   ;;  %s1343_s20 = sphi %s1389_s20, %s1697_s20   ;;  %s1339_s19 = sphi %s1387_s19, %s1696_s19   ;;  %s1335_s18 = sphi %s1385_s18, %s1695_s18  }
   0x6   : > { %s1410_s24 = sadd.s32 1, %s1347_s21   ;;  %s28_s25 = sadd.s32 1, %s1343_s20 }
   0x7   : > { %s25_s26 = ssub.s32 %s1347_s21, %s1410_s24  ;;  %p35_p0 = scmp.ne.s32.totalorder %s1343_s20, %s1339_s19 }
   0x8   : > { %p26_p1 = scmp.eq.s32.totalorder %s25_s26, 0  ;;  %p36_p2 = scmp.eq.s32.totalorder %s1347_s21, 0 }
   0x9   : > { %p41_p3 = scmp.ne.s32.totalorder %s1339_s19, %s1335_s18  ;;  %p42_p4 = scmp.eq.s32.totalorder %s1406_s22, 0 }
   0xa   : > { %s1422_s27 = scalar_select %p26_p1, %s1343_s20, %s28_s25  }
   0xb   : > { %p1424_p5 = por %p36_p2, %p35_p0  ;;  %p1428_p6 = por %p42_p4, %p41_p3 }
   0xc   : > { %p149_p7 = scmp.eq.s32.totalorder %s1406_s22, 1  ;;  %p155_p8 = scmp.eq.s32.totalorder %s1064_s23, 1 }
   0xd   : > { %p1157_p10 = scmp.lt.s32.totalorder %s1347_s21, 2  ;;  %s187_s7 = sand.u32 1, %s1343_s20  }
   0xe   : > { %p1435_p11 = por %p149_p7, %p35_p0  ;;  %p1439_p12 = por %p155_p8, %p41_p3 }
   0xf   : > { %s1068_s8 = sshll.u32 %s1347_s21, 7  ;;  %s1067_s9 = sshll.u32 %s187_s7, 3 }
  0x10   : > { %s1687_s30 = scalar_select %p1435_p11, 1, 0 }
  0x11   : > { %s1688_s6 = scalar_select %p1439_p12, 1, 0 }
  0x12   : > { %s1448_s12 = scalar_lea.hbm %s1678_s0, %s1068_s8  ;;  %s191_s13 = scalar_lea.vmem [#allocation2], %s1067_s9 }
  0x13   : > { %s198_s14 = sshll.u32 %s191_s13, 4  ;;  %p1452_p13 = pnand %p1157_p10, %p1424_p5  ;;  %s1456_s14 = int_to_ptr.vmem [resolvable:$true] %s198_s14 }
  0x14   : > { %s188_s16 = scalar_lea.sflag [#allocation3], %s187_s7  ;;  %s1251_s17 = scalar_lea.hbm %s1448_s12, 128 }
  0x15   : > { %p1252_p2 = scmp.ne.s32.totalorder %s1448_s12, %s1251_s17  ;;  %p1253_p3 = pneg %p1452_p13 }
  0x16   : > { %s1256_s26 = scalar_lea.hbm %s1678_s0, 256  ;;  %p1257_p5 = scmp.lt.u32.totalorder %s1448_s12, %s1678_s0 }
  0x17   : > { %p1254_p4 = pnand %p1253_p3, %p1252_p2  ;;  %p1258_p8 = scmp.lt.u32.totalorder %s1256_s26, %s1251_s17 }
  0x18   : > { %p1260_p9 = scmp.lt.u32.totalorder %s1251_s17, %s1448_s12 }
  0x19   : > { %p1255_p7 = pneg %p1254_p4  ;;  %p1259_p10 = por %p1258_p8, %p1257_p5 }
  0x1b   : > { %p1261_p0 = por %p1260_p9, %p1259_p10 }
  0x1d   : > { %p1262_p1 = pnand %p1261_p0, %p1255_p7 }
  0x1f   : > { %1265 = shalt.err (!%p1262_p1)
}
  0x20   : > { %s1266_s7 = scalar_lea.vmem %s1456_s14, 128  ;;  %s1349_s9 = smov [#allocation2]  }
  0x21   : > { %p1267_p2 = scmp.ne.s32.totalorder %s1456_s14, %s1266_s7  ;;  %s1271_s10 = sshll.u32 %s1349_s9, 4  ;;  %s1272_s10 = int_to_ptr.vmem [resolvable:$false] %s1271_s10 }
  0x22   : > { %s1273_s11 = scalar_lea.vmem %s1272_s10, 256  ;;  %p1274_p11 = scmp.lt.s32.totalorder %s1456_s14, %s1272_s10 }
  0x23   : > { %p1269_p4 = pnand %p1267_p2, %p1253_p3  ;;  %p1275_p5 = scmp.lt.s32.totalorder %s1273_s11, %s1266_s7 }
  0x25   : > { %p1270_p12 = pneg %p1269_p4  ;;  %p1276_p8 = por %p1275_p5, %p1274_p11 }
  0x27   : > { %p1277_p9 = pnand %p1276_p8, %p1270_p12 }
  0x29   : > { %1280 = shalt.err (!%p1277_p9)
}
  0x2a   : > { %1152 = dma.hbm_to_vmem [thread:$0]  (!%p1452_p13), %s1448_s12, 128, %s1456_s14, %s188_s16  }
  0x2b   : > { %p1690_p0 = scmp.lt.s32.totalorder %s1347_s21, 3  ;;  %p1691_p1 = scmp.ge.s32.totalorder %s1347_s21, 1 }
  0x2d   : > { %p204_p3 = pnand %p1691_p1, %p1690_p0 }
  0x2e   : > { %s1490_s13 = sand.u32 (!%p204_p3), 1, %s1339_s19  }
  0x2f   : > { %207 = sbr.rel (%p204_p3) target bundleno = 716 (0x2cc), region = 40  ;;  %s1070_s17 = sshll.u32 (!%p204_p3), %s1490_s13, 3 }
  0x30   : > { %s210_s23 = scalar_lea.sflag (!%p204_p3), [#allocation3], %s1490_s13  ;;  %s213_s15 = scalar_lea.vmem (!%p204_p3), [#allocation2], %s1070_s17 }
  0x36   : > { %1326 = dma.done.wait (%p1428_p6), %s210_s23, 128  }
  0x37   : > { %1328 = vsyncadd (%p1428_p6), %s210_s23, 4294967168  ;;  %v1350_v0 = vmov 0   ;;  %v1351_v1 = vmov 0.0   ;;  %vm1352_vm0 = vmmov 0   ;;  %v1195_v2 = vld [vmem:[%s1679_s1 + $0x4] ss:$12 sps:$4 sm:$0xff]   ;;  %v261_v16 = vlaneseq }
  0x38   : > { %376 = vmatprep.mubr.bf16.mxu1 %v1350_v0  ;;  %1125 = vmatprep.subr.bf16.mxu0 %v1351_v1  ;;  %v1197_v3 = vld [vmem:[%s1679_s1] ss:$12 sps:$4 sm:$0xff]   ;;  %v1198_v4 = vld [vmem:[%s1679_s1 + $0x1c] ss:$12 sps:$4 sm:$0xff]   ;;  %v1200_v5 = vld [vmem:[%s1679_s1 + $0x18] ss:$12 sps:$4 sm:$0xff]  }
  0x39   : > { %1141 = vmatprep.mubr.msk.bf16.mxu0 %vm1352_vm0, %v1351_v1  ;;  %344 = vmatprep.subr.bf16.mxu1 %v1195_v2  ;;  %v1201_v6 = vld [vmem:[%s1679_s1 + $0x34] ss:$12 sps:$4 sm:$0xff]   ;;  %v1203_v7 = vld [vmem:[%s1679_s1 + $0x30] ss:$12 sps:$4 sm:$0xff]   ;;  %v1204_v8 = vld [vmem:[%s1679_s1 + $0x4c] ss:$12 sps:$4 sm:$0xff]  }
  0x3a   : > { %345 = vmatpush1.bf16.msra.mxu1 %v1197_v3  ;;  %v1206_v9 = vld [vmem:[%s1679_s1 + $0x48] ss:$12 sps:$4 sm:$0xff]   ;;  %vm340_vm1 = vcmask 523264   ;;  %v1208_v13 = vld [vmem:[%s1679_s1 + $0x20] ss:$12 sps:$4 sm:$0xff]   ;;  %v1551_v17 = vshrl.u32 %v261_v16, 7 }
  0x3b   : > { %346 = vmatprep.subr.bf16.mxu1 %v1198_v4  ;;  %v1527_v10 = vld [vmem:[%s213_s15] sm:$0xff]  ;;  %v1210_v15 = vld [vmem:[%s1679_s1 + $0x50] ss:$12 sps:$4 sm:$0xff]   ;;  %v1353_v63 = vmov 1966171168   ;;  %vm874_vm2 = vcmask 1041409  }
  0x3c   : > { %v242_v11 = vpack.c.bf16 %v1527_v10, %v1527_v10  ;;  %v1207_v12 = vld [vmem:[%s1679_s1 + $0x8] ss:$12 sps:$4 sm:$0xff]   ;;  %v1209_v14 = vld [vmem:[%s1679_s1 + $0x38] ss:$12 sps:$4 sm:$0xff]   ;;  %v267_v18 = vsub.s32 1, %v1551_v17  ;;  %v1561_v22 = vsub.s32 2, %v1551_v17  ;;  %v484_v0 = vunpack.c.l.s4 %v1353_v63 }
  0x3d   : > { %v1557_v19 = vld [vmem:[%s1680_s2] sm:$0x7]  ;;  %v1564_v24 = vsub.s32 0, %v1551_v17  ;;  %v448_v30 = vsub.s32 3, %v1551_v17  ;;  %v462_v33 = vsub.s32 5, %v1551_v17  ;;  %v455_v34 = vsub.s32 4, %v1551_v17 }
  0x3e   : > { %347 = vmatpush1.bf16.msra.mxu1 %v1200_v5  ;;  %v268_v20 = vrot.slane %v1557_v19, %v267_v18  ;;  %v476_v38 = vsub.s32 7, %v1551_v17  ;;  %v469_v39 = vsub.s32 6, %v1551_v17  ;;  %v1211_v55 = vld [vmem:[%s1681_s3] sm:$0xff]   ;;  %v1212_v56 = vld [vmem:[%s1681_s3 + $0x8] sm:$0xff]   ;;  %v1213_v57 = vld [vmem:[%s1681_s3 + $0x10] sm:$0xff]   ;;  %v272_v2 = vrot.slane %v1557_v19, %v1561_v22  ;;  %s1096_s25 = sshll.u32 %s1406_s22, 7 }
  0x3f   : > { %348 = vmatprep.subr.bf16.mxu1 %v1201_v6  ;;  %v264_v35 = vrot.slane %v1557_v19, %v1564_v24  ;;  %1126 = vmatpush3.bf16.msra.mxu0 %v1211_v55  ;;  %v1214_v58 = vld [vmem:[%s1681_s3 + $0x18] sm:$0xff]   ;;  %v1215_v59 = vld [vmem:[%s1681_s3 + $0x20] sm:$0xff]   ;;  %v1216_v60 = vld [vmem:[%s1681_s3 + $0x28] sm:$0xff]   ;;  %v485_v3 = vunpack.c.0.s8 %v484_v0  ;;  %vm876_vm3 = vcmask 1042434   ;;  %vm878_vm4 = vcmask 1043459   ;;  %s239_s29 = scalar_lea.vmem [#allocation5], %s1070_s17  ;;  %s1633_s8 = scalar_lea.hbm %s1683_s5, %s1096_s25 }
  0x40   : > { %1127 = vmatprep.subr.bf16.mxu0 %v1351_v1  ;;  %v1217_v61 = vld [vmem:[%s1681_s3 + $0x30] sm:$0xff]   ;;  %v1218_v62 = vld [vmem:[%s1681_s3 + $0x38] sm:$0xff]   ;;  %vm880_vm5 = vcmask 1044484   ;;  %vm882_vm6 = vcmask 1045509   ;;  %vm884_vm7 = vcmask 1046534   ;;  %vm886_vm8 = vcmask 1047559  }
  0x41   : > { %v488_v5 = vsub.s32 %v485_v3, %v1551_v17  ;;  %s994_s26 = sshll.u32 %s239_s29, 4  ;;  %s981_s22 = scalar_lea.sflag [#allocation4], %s1490_s13  ;;  %s1635_s26 = int_to_ptr.vmem [resolvable:$true] %s994_s26 }
  0x42   : > { %349 = vmatpush1.bf16.msra.mxu1 %v1203_v7  ;;  %s1281_s17 = scalar_lea.vmem %s1635_s26, 128  ;;  %p1692_p11 = scmp.ne.s32.totalorder %s1687_s30, 0 }
  0x43   : > { %350 = vmatprep.subr.bf16.mxu1 %v1204_v8  ;;  %1128 = vmatpush3.bf16.msra.mxu0 %v1212_v56  ;;  %p1282_p6 = scmp.ne.s32.totalorder %s1635_s26, %s1281_s17  ;;  %s1354_s7 = smov [#allocation5]  }
  0x44   : > { %1129 = vmatprep.subr.bf16.mxu0 %v1351_v1  ;;  %s1285_s9 = sshll.u32 %s1354_s7, 4  ;;  %s1286_s9 = int_to_ptr.vmem [resolvable:$false] %s1285_s9 }
  0x45   : > { %p1283_p12 = pnand %p1282_p6, %p1692_p11  ;;  %s1287_s10 = scalar_lea.vmem %s1286_s9, 256 }
  0x46   : > { %351 = vmatpush1.bf16.msra.mxu1 %v1206_v9  ;;  %p1288_p7 = scmp.lt.s32.totalorder %s1635_s26, %s1286_s9  ;;  %p1289_p10 = scmp.lt.s32.totalorder %s1287_s10, %s1281_s17 }
  0x47   : > { %1113 = vmatprep.subr.bf16.mxu1 %v1351_v1  ;;  %1130 = vmatpush3.bf16.msra.mxu0 %v1213_v57  ;;  %p1284_p13 = pneg %p1283_p12 }
  0x48   : > { %1131 = vmatprep.subr.bf16.mxu0 %v1351_v1  ;;  %p1290_p2 = por %p1289_p10, %p1288_p7 }
  0x49   : > { %1084 = vmatmul.mubr.msk.bf16.vlgmr.msra.gmra.mrb[0].mxu1 %vm340_vm1, %v242_v11 }
  0x4a   : > { %1114 = vmatpush3.bf16.msra.mxu1 %v1207_v12  ;;  %1121 = vmatprep.mubr.msk.bf16.mxu1 %vm1352_vm0, %v1351_v1  ;;  %p1291_p4 = pnand %p1290_p2, %p1284_p13 }
  0x4b   : > { %1115 = vmatprep.subr.bf16.mxu1 %v1351_v1  ;;  %1132 = vmatpush3.bf16.msra.mxu0 %v1214_v58 }
  0x4c   : > { %1133 = vmatprep.subr.bf16.mxu0 %v1351_v1 }
  0x4e   : > { %1116 = vmatpush3.bf16.msra.mxu1 %v1208_v13 }
  0x4f   : > { %1117 = vmatprep.subr.bf16.mxu1 %v1351_v1  ;;  %1134 = vmatpush3.bf16.msra.mxu0 %v1215_v59 }
  0x50   : > { %1135 = vmatprep.subr.bf16.mxu0 %v1351_v1 }
  0x52   : > { %1118 = vmatpush3.bf16.msra.mxu1 %v1209_v14 }
  0x53   : > { %1119 = vmatprep.subr.bf16.mxu1 %v1351_v1  ;;  %1136 = vmatpush3.bf16.msra.mxu0 %v1216_v60 }
  0x54   : > { %1137 = vmatprep.subr.bf16.mxu0 %v1351_v1 }
  0x56   : > { %1120 = vmatpush3.bf16.msra.mxu1 %v1210_v15 }
  0x57   : > { %1138 = vmatpush3.bf16.msra.mxu0 %v1217_v61 }
  0x58   : > { %1139 = vmatprep.subr.bf16.mxu0 %v1351_v1 }
  0x59   : > { %1122 = vmatmul.mubr.msk.bf16.vlgmr.msra.gmra.mrb[4].mxu1 %vm340_vm1, %v242_v11 }
  0x5b   : > { %1140 = vmatpush3.bf16.msra.mxu0 %v1218_v62 }
 0x11c   : > { %v378_v21 = vpop.f32.mrb[0].mxu1 }
 0x11d   : > { %v380_v23 = vpop.f32.mrb[1].mxu1  ;;  %v379_v40 = vadd.f32 %v378_v21, %v264_v35 }
 0x11e   : > { %v381_v25 = vadd.f32 %v380_v23, %v268_v20  ;;  %v382_v26 = vpop.f32.mrb[2].mxu1 }
 0x11f   : > { %v383_v27 = vpop.f32.mrb[3].mxu1  ;;  %v709_v47 = vrot.slane %v379_v40, %v267_v18  ;;  %v702_v48 = vrot.slane %v379_v40, %v1564_v24  ;;  %v723_v49 = vrot.slane %v379_v40, %v448_v30  ;;  %v716_v50 = vrot.slane %v379_v40, %v1561_v22 }
 0x120   : > { %v442_v28 = vrot.slane %v381_v25, %v1561_v22  ;;  %v428_v29 = vrot.slane %v381_v25, %v1564_v24  ;;  %v449_v31 = vrot.slane %v381_v25, %v448_v30  ;;  %v435_v32 = vrot.slane %v381_v25, %v267_v18 }
 0x121   : > { %v463_v36 = vrot.slane %v381_v25, %v462_v33  ;;  %v456_v37 = vrot.slane %v381_v25, %v455_v34  ;;  %v477_v41 = vrot.slane %v381_v25, %v476_v38  ;;  %v470_v42 = vrot.slane %v381_v25, %v469_v39 }
 0x122   : > { %444 = vbcast.lane.b32.xlu1 %v442_v28, 256  ;;  %430 = vbcast.lane.b32.xlu0 %v428_v29, 256  ;;  %v737_v51 = vrot.slane %v379_v40, %v462_v33  ;;  %v730_v52 = vrot.slane %v379_v40, %v455_v34  ;;  %v751_v53 = vrot.slane %v379_v40, %v476_v38 }
 0x123   : > { %v744_v54 = vrot.slane %v379_v40, %v469_v39 }
 0x126   : > { %451 = vbcast.lane.b32.xlu1 %v449_v31, 256  ;;  %437 = vbcast.lane.b32.xlu0 %v435_v32, 256 }
 0x12a   : > { %465 = vbcast.lane.b32.xlu1 %v463_v36, 256  ;;  %458 = vbcast.lane.b32.xlu0 %v456_v37, 256 }
 0x12c   : > { %v419_v43 = vpop.f32.mrb[4].mxu1 }
 0x12d   : > { %v1123_v44 = vpop.f32.mrb[5].mxu1  ;;  %v420_v4 = vadd.f32 %v419_v43, %v272_v2 }
 0x12e   : > { %479 = vbcast.lane.b32.xlu1 %v477_v41, 256  ;;  %472 = vbcast.lane.b32.xlu0 %v470_v42, 256  ;;  %v422_v45 = vpop.f32.mrb[6].mxu1 }
 0x12f   : > { %v1124_v46 = vpop.f32.mrb[7].mxu1  ;;  %v489_v6 = vrot.slane %v420_v4, %v488_v5  ;;  %v482_v9 = vcombine.high %v420_v4, %v420_v4 }
 0x131   : > { %v497_v7 = vcombine.high %v489_v6, %v489_v6  ;;  %v505_v8 = vrot.slane %v489_v6, %v488_v5  ;;  %v496_v13 = vrot.slane %v482_v9, %v488_v5 }
 0x132   : > { %711 = vbcast.lane.b32.xlu1 %v709_v47, 256  ;;  %704 = vbcast.lane.b32.xlu0 %v702_v48, 256 }
 0x133   : > { %v527_v11 = vcombine.high %v505_v8, %v505_v8  ;;  %v519_v12 = vrot.slane %v497_v7, %v488_v5  ;;  %v534_v1 = vrot.slane %v505_v8, %v1564_v24  ;;  %v498_v16 = vcombine.high %v496_v13, %v496_v13 }
 0x134   : > { %v512_v25 = vrot.slane %v496_v13, %v488_v5 }
 0x135   : > { %v542_v14 = vrot.slane %v527_v11, %v1564_v24  ;;  %v529_v15 = vcombine.high %v519_v12, %v519_v12  ;;  %v538_v17 = vrot.slane %v519_v12, %v1564_v24  ;;  %v526_v23 = vrot.slane %v498_v16, %v488_v5 }
 0x136   : > { %725 = vbcast.lane.b32.xlu1 %v723_v49, 256  ;;  %718 = vbcast.lane.b32.xlu0 %v716_v50, 256  ;;  %v550_v35 = vrot.slane %v512_v25, %v1564_v24  ;;  %v528_v43 = vcombine.high %v512_v25, %v512_v25 }
 0x137   : > { %v546_v22 = vrot.slane %v529_v15, %v1564_v24  ;;  %v554_v34 = vrot.slane %v526_v23, %v1564_v24  ;;  %v530_v36 = vcombine.high %v526_v23, %v526_v23 }
 0x138   : > { %v558_v58 = vrot.slane %v528_v43, %v1564_v24 }
 0x139   : > { %v562_v50 = vrot.slane %v530_v36, %v1564_v24 }
 0x13a   : > { %739 = vbcast.lane.b32.xlu1 %v737_v51, 256  ;;  %732 = vbcast.lane.b32.xlu0 %v730_v52, 256 }
 0x13e   : > { %753 = vbcast.lane.b32.xlu1 %v751_v53, 256  ;;  %746 = vbcast.lane.b32.xlu0 %v744_v54, 256 }
 0x194   : > { %v445_v18 = vpop.permute.xlu1 %444  ;;  %v431_v20 = vpop.permute.xlu0 %430 }
 0x195   : > { %v573_v19 = vmul.f32 %v542_v14, %v445_v18  ;;  %v571_v21 = vmul.f32 %v534_v1, %v431_v20 }
 0x197   : > { %v591_v26 = vrot.slane %v573_v19, 4  ;;  %v579_v27 = vrot.slane %v571_v21, 4 }
 0x198   : > { %v452_v28 = vpop.permute.xlu1 %451  ;;  %v438_v29 = vpop.permute.xlu0 %437 }
 0x199   : > { %v592_v30 = vmax.f32 %v573_v19, %v591_v26  ;;  %v580_v31 = vmax.f32 %v571_v21, %v579_v27  ;;  %v574_v32 = vmul.f32 %v546_v22, %v452_v28  ;;  %v572_v33 = vmul.f32 %v538_v17, %v438_v29 }
 0x19b   : > { %v593_v37 = vrot.slane %v592_v30, 2  ;;  %v581_v38 = vrot.slane %v580_v31, 2  ;;  %v597_v39 = vrot.slane %v574_v32, 4  ;;  %v585_v40 = vrot.slane %v572_v33, 4 }
 0x19c   : > { %v466_v41 = vpop.permute.xlu1 %465  ;;  %v459_v42 = vpop.permute.xlu0 %458 }
 0x19d   : > { %v594_v44 = vmax.f32 %v592_v30, %v593_v37  ;;  %v582_v45 = vmax.f32 %v580_v31, %v581_v38  ;;  %v598_v46 = vmax.f32 %v574_v32, %v597_v39  ;;  %v586_v47 = vmax.f32 %v572_v33, %v585_v40 }
 0x19e   : > { %v576_v48 = vmul.f32 %v554_v34, %v466_v41  ;;  %v575_v49 = vmul.f32 %v550_v35, %v459_v42 }
 0x19f   : > { %v595_v51 = vrot.slane %v594_v44, 1  ;;  %v583_v52 = vrot.slane %v582_v45, 1  ;;  %v599_v53 = vrot.slane %v598_v46, 2  ;;  %v587_v54 = vrot.slane %v586_v47, 2 }
 0x1a0   : > { %v609_v55 = vrot.slane %v576_v48, 4  ;;  %v603_v56 = vrot.slane %v575_v49, 4  ;;  %v480_v57 = vpop.permute.xlu1 %479  ;;  %v473_v59 = vpop.permute.xlu0 %472 }
 0x1a1   : > { %v596_v60 = vmax.f32 %v594_v44, %v595_v51  ;;  %v584_v61 = vmax.f32 %v582_v45, %v583_v52  ;;  %v600_v62 = vmax.f32 %v598_v46, %v599_v53  ;;  %v588_v63 = vmax.f32 %v586_v47, %v587_v54 }
 0x1a2   : > { %v610_v0 = vmax.f32 %v576_v48, %v609_v55  ;;  %v604_v2 = vmax.f32 %v575_v49, %v603_v56  ;;  %v578_v3 = vmul.f32 %v562_v50, %v480_v57  ;;  %v577_v4 = vmul.f32 %v558_v58, %v473_v59 }
 0x1a3   : > { %v629_v5 = vsub.f32 %v573_v19, %v596_v60  ;;  %v627_v6 = vsub.f32 %v571_v21, %v584_v61  ;;  %v601_v7 = vrot.slane %v600_v62, 1  ;;  %v589_v8 = vrot.slane %v588_v63, 1 }
 0x1a4   : > { %v611_v9 = vrot.slane %v610_v0, 2  ;;  %v605_v11 = vrot.slane %v604_v2, 2  ;;  %v621_v12 = vrot.slane %v578_v3, 4  ;;  %v615_v13 = vrot.slane %v577_v4, 4  ;;  %v705_v35 = vpop.permute.xlu0 %704  ;;  %v712_v43 = vpop.permute.xlu1 %711 }
 0x1a5   : > { %v639_v14 = vmul.f32 1.442695, %v629_v5  ;;  %v635_v1 = vmul.f32 1.442695, %v627_v6  ;;  %v602_v24 = vmax.f32 %v600_v62, %v601_v7  ;;  %v590_v15 = vmax.f32 %v588_v63, %v589_v8 }
 0x1a6   : > { %v612_v16 = vmax.f32 %v610_v0, %v611_v9  ;;  %v606_v18 = vmax.f32 %v604_v2, %v605_v11  ;;  %v622_v20 = vmax.f32 %v578_v3, %v621_v12  ;;  %v616_v22 = vmax.f32 %v577_v4, %v615_v13 }
 0x1a7   : > { %1219 = vpow2.f32 %v639_v14  ;;  %v630_v17 = vsub.f32 %v574_v32, %v602_v24  ;;  %v628_v23 = vsub.f32 %v572_v33, %v590_v15 }
 0x1a8   : > { %1221 = vpow2.f32 %v635_v1  ;;  %v613_v19 = vrot.slane %v612_v16, 1  ;;  %v607_v21 = vrot.slane %v606_v18, 1  ;;  %v623_v25 = vrot.slane %v622_v20, 2  ;;  %v719_v46 = vpop.permute.xlu0 %718  ;;  %v726_v61 = vpop.permute.xlu1 %725 }
 0x1a9   : > { %v641_v26 = vmul.f32 1.442695, %v630_v17  ;;  %v637_v27 = vmul.f32 1.442695, %v628_v23  ;;  %v617_v28 = vrot.slane %v616_v22, 2 }
 0x1aa   : > { %v614_v29 = vmax.f32 %v612_v16, %v613_v19  ;;  %v608_v30 = vmax.f32 %v606_v18, %v607_v21  ;;  %v624_v31 = vmax.f32 %v622_v20, %v623_v25 }
 0x1ab   : > { %1223 = vpow2.f32 %v641_v26  ;;  %v618_v34 = vmax.f32 %v616_v22, %v617_v28 }
 0x1ac   : > { %1225 = vpow2.f32 %v637_v27  ;;  %v632_v36 = vsub.f32 %v576_v48, %v614_v29  ;;  %v631_v37 = vsub.f32 %v575_v49, %v608_v30  ;;  %v625_v38 = vrot.slane %v624_v31, 1  ;;  %v740_v17 = vpop.permute.xlu1 %739 }
 0x1ad   : > { %v619_v39 = vrot.slane %v618_v34, 1 }
 0x1ae   : > { %v626_v32 = vmax.f32 %v624_v31, %v625_v38  ;;  %v645_v33 = vmul.f32 1.442695, %v632_v36  ;;  %v643_v41 = vmul.f32 1.442695, %v631_v37 }
 0x1af   : > { %v620_v40 = vmax.f32 %v618_v34, %v619_v39 }
 0x1b0   : > { %v634_v42 = vsub.f32 %v578_v3, %v626_v32  ;;  %1227 = vpow2.f32 %v645_v33 }
 0x1b1   : > { %v1220_v44 = vpop.eup %1219  ;;  %v633_v45 = vsub.f32 %v577_v4, %v620_v40  ;;  %1229 = vpow2.f32 %v643_v41 }
 0x1b2   : > { %v1222_v47 = vpop.eup %1221  ;;  %v649_v50 = vmul.f32 1.442695, %v634_v42  ;;  %v663_v51 = vrot.slane %v1220_v44, 4  ;;  %v757_v52 = vmul.f32 %v1220_v44, %v719_v46 }
 0x1b3   : > { %v651_v53 = vrot.slane %v1222_v47, 4  ;;  %v755_v54 = vmul.f32 %v1222_v47, %v705_v35  ;;  %v647_v48 = vmul.f32 1.442695, %v633_v45  ;;  %v733_v35 = vpop.permute.xlu0 %732  ;;  %v754_v45 = vpop.permute.xlu1 %753 }
 0x1b4   : > { %v664_v49 = vadd.f32 %v1220_v44, %v663_v51  ;;  %v775_v55 = vrot.slane %v757_v52, 4  ;;  %1231 = vpow2.f32 %v649_v50 }
 0x1b5   : > { %v1224_v56 = vpop.eup %1223  ;;  %v652_v57 = vadd.f32 %v1222_v47, %v651_v53  ;;  %v763_v59 = vrot.slane %v755_v54, 4  ;;  %1233 = vpow2.f32 %v647_v48 }
 0x1b6   : > { %v1226_v58 = vpop.eup %1225  ;;  %v669_v60 = vrot.slane %v1224_v56, 4  ;;  %v665_v62 = vrot.slane %v664_v49, 2  ;;  %v758_v3 = vmul.f32 %v1224_v56, %v726_v61  ;;  %v776_v5 = vadd.f32 %v775_v55, %v757_v52 }
 0x1b7   : > { %v657_v63 = vrot.slane %v1226_v58, 4  ;;  %v756_v0 = vmul.f32 %v1226_v58, %v712_v43  ;;  %v653_v2 = vrot.slane %v652_v57, 2  ;;  %v764_v11 = vadd.f32 %v763_v59, %v755_v54 }
 0x1b8   : > { %v670_v4 = vadd.f32 %v1224_v56, %v669_v60  ;;  %v666_v9 = vadd.f32 %v665_v62, %v664_v49  ;;  %v781_v24 = vrot.slane %v758_v3, 4  ;;  %v777_v16 = vrot.slane %v776_v5, 2 }
 0x1b9   : > { %v658_v6 = vadd.f32 %v1226_v58, %v657_v63  ;;  %v769_v7 = vrot.slane %v756_v0, 4  ;;  %v654_v8 = vadd.f32 %v653_v2, %v652_v57  ;;  %v765_v25 = vrot.slane %v764_v11, 2  ;;  %v747_v57 = vpop.permute.xlu0 %746 }
 0x1ba   : > { %v671_v12 = vrot.slane %v670_v4, 2  ;;  %v1228_v18 = vpop.eup %1227  ;;  %v667_v22 = vrot.slane %v666_v9, 1  ;;  %v782_v27 = vadd.f32 %v781_v24, %v758_v3  ;;  %v1619_v30 = vadd.f32 %v777_v16, %v776_v5 }
 0x1bb   : > { %v659_v13 = vrot.slane %v658_v6, 2  ;;  %v770_v14 = vadd.f32 %v769_v7, %v756_v0  ;;  %v655_v1 = vrot.slane %v654_v8, 1  ;;  %v1230_v23 = vpop.eup %1229  ;;  %v681_v31 = vrot.slane %v1228_v18, 4 }
 0x1bc   : > { %v672_v15 = vadd.f32 %v671_v12, %v670_v4  ;;  %v760_v34 = vmul.f32 %v1228_v18, %v740_v17  ;;  %v668_v37 = vadd.f32 %v667_v22, %v666_v9  ;;  %v675_v38 = vrot.slane %v1230_v23, 4 }
 0x1bd   : > { %v660_v20 = vadd.f32 %v659_v13, %v658_v6  ;;  %v771_v19 = vrot.slane %v770_v14, 2  ;;  %v656_v21 = vadd.f32 %v655_v1, %v654_v8  ;;  %v759_v39 = vmul.f32 %v1230_v23, %v733_v35 }
 0x1be   : > { %v1232_v28 = vpop.eup %1231  ;;  %v673_v29 = vrot.slane %v672_v15, 1  ;;  %v766_v40 = vadd.f32 %v765_v25, %v764_v11  ;;  %v682_v41 = vadd.f32 %v1228_v18, %v681_v31  ;;  %v793_v42 = vrot.slane %v760_v34, 4 }
 0x1bf   : > { %v661_v26 = vrot.slane %v660_v20, 1  ;;  %v1234_v32 = vpop.eup %1233  ;;  %v772_v33 = vadd.f32 %v771_v19, %v770_v14  ;;  %1235 = vrcp.f32 %v656_v21  ;;  %v676_v43 = vadd.f32 %v1230_v23, %v675_v38 }
 0x1c0   : > { %v787_v44 = vrot.slane %v759_v39, 4  ;;  %v674_v46 = vadd.f32 %v673_v29, %v672_v15  ;;  %v683_v47 = vrot.slane %v682_v41, 2  ;;  %v693_v50 = vrot.slane %v1232_v28, 4 }
 0x1c1   : > { %v662_v36 = vadd.f32 %v661_v26, %v660_v20  ;;  %v762_v51 = vmul.f32 %v1232_v28, %v754_v45  ;;  %v783_v52 = vrot.slane %v782_v27, 2  ;;  %v677_v53 = vrot.slane %v676_v43, 2 }
 0x1c2   : > { %v687_v54 = vrot.slane %v1234_v32, 4  ;;  %v684_v48 = vadd.f32 %v683_v47, %v682_v41  ;;  %v788_v49 = vadd.f32 %v787_v44, %v759_v39  ;;  %v694_v55 = vadd.f32 %v1232_v28, %v693_v50 }
 0x1c3   : > { %1237 = vrcp.f32 %v662_v36  ;;  %v805_v56 = vrot.slane %v762_v51, 4  ;;  %v794_v58 = vadd.f32 %v793_v42, %v760_v34  ;;  %v678_v59 = vadd.f32 %v677_v53, %v676_v43 }
 0x1c4   : > { %1239 = vrcp.f32 %v668_v37  ;;  %v688_v60 = vadd.f32 %v1234_v32, %v687_v54  ;;  %v761_v61 = vmul.f32 %v1234_v32, %v747_v57  ;;  %v773_v62 = vrot.slane %v772_v33, 1 }
 0x1c5   : > { %1241 = vrcp.f32 %v674_v46  ;;  %v685_v63 = vrot.slane %v684_v48, 1  ;;  %v695_v0 = vrot.slane %v694_v55, 2  ;;  %v767_v2 = vrot.slane %v766_v40, 1 }
 0x1c6   : > { %v679_v3 = vrot.slane %v678_v59, 1  ;;  %v806_v4 = vadd.f32 %v805_v56, %v762_v51  ;;  %v784_v5 = vadd.f32 %v783_v52, %v782_v27  ;;  %v789_v7 = vrot.slane %v788_v49, 2 }
 0x1c7   : > { %v686_v6 = vadd.f32 %v685_v63, %v684_v48  ;;  %v696_v8 = vadd.f32 %v695_v0, %v694_v55  ;;  %v795_v9 = vrot.slane %v794_v58, 2  ;;  %v689_v12 = vrot.slane %v688_v60, 2 }
 0x1c8   : > { %v680_v11 = vadd.f32 %v679_v3, %v678_v59  ;;  %v799_v13 = vrot.slane %v761_v61, 4  ;;  %v774_v1 = vadd.f32 %v773_v62, %v772_v33  ;;  %v779_v24 = vrot.slane %v1619_v30, 1 }
 0x1c9   : > { %v1236_v14 = vpop.eup %1235  ;;  %1243 = vrcp.f32 %v686_v6  ;;  %v697_v15 = vrot.slane %v696_v8, 1  ;;  %v768_v18 = vadd.f32 %v767_v2, %v766_v40  ;;  %v807_v20 = vrot.slane %v806_v4, 2 }
 0x1ca   : > { %1245 = vrcp.f32 %v680_v11  ;;  %v785_v17 = vrot.slane %v784_v5, 1  ;;  %v790_v23 = vadd.f32 %v789_v7, %v788_v49  ;;  %v796_v26 = vadd.f32 %v795_v9, %v794_v58 }
 0x1cb   : > { %v698_v19 = vadd.f32 %v697_v15, %v696_v8  ;;  %v819_v25 = vmul.f32 %v1236_v14, %v768_v18  ;;  %v690_v27 = vadd.f32 %v689_v12, %v688_v60  ;;  %v800_v28 = vadd.f32 %v799_v13, %v761_v61  ;;  %v1086_v15 = vld [vmem:[%s1682_s4] ss:$0 sm:$0xff] }
 0x1cc   : > { %v780_v29 = vadd.f32 %v779_v24, %v1619_v30  ;;  %v808_v34 = vadd.f32 %v807_v20, %v806_v4  ;;  %v791_v38 = vrot.slane %v790_v23, 1  ;;  %v786_v33 = vadd.f32 %v785_v17, %v784_v5 }
 0x1cd   : > { %v1238_v16 = vpop.eup %1237  ;;  %1247 = vrcp.f32 %v698_v19  ;;  %v691_v35 = vrot.slane %v690_v27, 1  ;;  %v801_v39 = vrot.slane %v800_v28, 2  ;;  %v827_v32 = vpack.c.bf16 %v819_v25, %v819_v25 }
 0x1ce   : > { %v820_v22 = vmul.f32 %v1238_v16, %v774_v1  ;;  %v1240_v21 = vpop.eup %1239  ;;  %v797_v40 = vrot.slane %v796_v26, 1  ;;  %v809_v44 = vrot.slane %v808_v34, 1  ;;  %v792_v30 = vadd.f32 %v791_v38, %v790_v23 }
 0x1cf   : > { %v1242_v36 = vpop.eup %1241  ;;  %v821_v37 = vmul.f32 %v1240_v21, %v780_v29  ;;  %v692_v41 = vadd.f32 %v691_v35, %v690_v27  ;;  %v802_v47 = vadd.f32 %v801_v39, %v800_v28  ;;  %v866_v51 = vunpack.c.l.b16 %v827_v32 }
 0x1d0   : > { %v828_v31 = vpack.c.bf16 %v820_v22, %v820_v22  ;;  %v822_v43 = vmul.f32 %v1242_v36, %v786_v33  ;;  %v798_v52 = vadd.f32 %v797_v40, %v796_v26  ;;  %v810_v55 = vadd.f32 %v809_v44, %v808_v34 }
 0x1d1   : > { %1249 = vrcp.f32 %v692_v41  ;;  %v829_v46 = vpack.c.bf16 %v821_v37, %v821_v37  ;;  %v803_v59 = vrot.slane %v802_v47, 1 }
 0x1d2   : > { %v867_v42 = vunpack.c.l.b16 %v828_v31  ;;  %v830_v48 = vpack.c.bf16 %v822_v43, %v822_v43 }
 0x1d3   : > { %v1244_v45 = vpop.eup %1243  ;;  %v868_v57 = vunpack.c.l.b16 %v829_v46  ;;  %v804_v2 = vadd.f32 %v803_v59, %v802_v47 }
 0x1d4   : > { %v1246_v50 = vpop.eup %1245  ;;  %v875_v54 = vsel %vm874_vm2, %v867_v42, %v866_v51  ;;  %v824_v49 = vmul.f32 %v1244_v45, %v798_v52  ;;  %v869_v62 = vunpack.c.l.b16 %v830_v48 }
 0x1d5   : > { %v823_v53 = vmul.f32 %v1246_v50, %v792_v30  ;;  %v877_v61 = vsel %vm876_vm3, %v868_v57, %v875_v54 }
 0x1d6   : > { %v832_v63 = vpack.c.bf16 %v824_v49, %v824_v49  ;;  %v879_v5 = vsel %vm878_vm4, %v869_v62, %v877_v61 }
 0x1d7   : > { %v1248_v56 = vpop.eup %1247  ;;  %v831_v58 = vpack.c.bf16 %v823_v53, %v823_v53 }
 0x1d8   : > { %v826_v60 = vmul.f32 %v1248_v56, %v810_v55  ;;  %v871_v7 = vunpack.c.l.b16 %v832_v63 }
 0x1d9   : > { %v870_v0 = vunpack.c.l.b16 %v831_v58 }
 0x1da   : > { %v834_v4 = vpack.c.bf16 %v826_v60, %v826_v60 }
 0x1db   : > { %v1250_v3 = vpop.eup %1249  ;;  %v881_v9 = vsel %vm880_vm5, %v870_v0, %v879_v5 }
 0x1dc   : > { %v825_v6 = vmul.f32 %v1250_v3, %v804_v2  ;;  %v873_v11 = vunpack.c.l.b16 %v834_v4  ;;  %v883_v13 = vsel %vm882_vm6, %v871_v7, %v881_v9 }
 0x1de   : > { %v833_v8 = vpack.c.bf16 %v825_v6, %v825_v6 }
 0x1e0   : > { %v872_v12 = vunpack.c.l.b16 %v833_v8 }
 0x1e2   : > { %v885_v14 = vsel %vm884_vm7, %v872_v12, %v883_v13 }
 0x1e3   : > { %v887_v1 = vsel %vm886_vm8, %v873_v11, %v885_v14 }
 0x1e4   : > { %v888_v24 = vpack.c.b16 %v887_v1, %v887_v1 }
 0x1e6   : > { %1142 = vmatmul.mubr.bf16.vlgmr.msra.gmra.mrb[0].mxu0 %v888_v24 }
 0x2b9   : > { %v972_v16 = vpop.f32.mrb[0].mxu0 }
 0x2ba   : > { %v973_v18 = vadd.f32 %v1086_v15, %v972_v16  ;;  %v1143_v20 = vpop.f32.mrb[1].mxu0 }
 0x2bb   : > { %v975_v22 = vpop.f32.mrb[2].mxu0 }
 0x2bc   : > { %v978_v17 = vadd.f32 %v973_v18, %v1527_v10  ;;  %v1144_v23 = vpop.f32.mrb[3].mxu0 }
 0x2be   : > { %979 = vst.msk [vmem:[%s239_s29] sm:$0xff] %vm340_vm1, %v978_v17 }
 0x2bf   : > { %1294 = shalt.err (!%p1291_p4)
}
 0x2c0   : > { %s1295_s13 = scalar_lea.hbm %s1633_s8, 128  ;;  %s1299_s12 = scalar_lea.hbm %s1683_s5, 256 }
 0x2c1   : > { %p1296_p5 = scmp.ne.s32.totalorder %s1633_s8, %s1295_s13  ;;  %p1300_p0 = scmp.lt.u32.totalorder %s1633_s8, %s1683_s5 }
 0x2c2   : > { %p1301_p1 = scmp.lt.u32.totalorder %s1299_s12, %s1295_s13  ;;  %p1303_p6 = scmp.lt.u32.totalorder %s1295_s13, %s1633_s8 }
 0x2c3   : > { %p1297_p8 = pnand %p1296_p5, %p1692_p11 }
 0x2c4   : > { %p1302_p3 = por %p1301_p1, %p1300_p0 }
 0x2c5   : > { %p1298_p9 = pneg %p1297_p8 }
 0x2c6   : > { %p1304_p12 = por %p1303_p6, %p1302_p3 }
 0x2c8   : > { %p1305_p13 = pnand %p1304_p12, %p1298_p9 }
 0x2ca   : > { %1308 = shalt.err (!%p1305_p13)
}
 0x2cb   : > { %1147 = dma.vmem_to_hbm [thread:$0]  (%p1692_p11), %s1635_s26, 128, %s1633_s8, %s981_s22  }
 0x2cc PF: > { %s1006_s25 = sand.u32 1, %s1335_s18   ;;  %p1693_p7 = scmp.ne.s32.totalorder %s1688_s6, 0 }
 0x2cd   : > { %p1694_p10 = scmp.ge.s32.totalorder %s1347_s21, 2  ;;  %s1007_s29 = scalar_lea.sflag [#allocation4], %s1006_s25 }
 0x2cf   : > { %p1154_p2 = pnand %p1694_p10, %p1693_p7 }
 0x2d1   : > { %1330 = dma.done.wait (!%p1154_p2), %s1007_s29, 128  }
 0x2d2   : > { %1332 = vsyncadd (!%p1154_p2), %s1007_s29, 4294967168  ;;  %p18_p4 = scmp.ge.s32.totalorder %s1410_s24, 4   ;;  %s1695_s18 = smov %s1339_s19 }
 0x2d3   : > { %s1696_s19 = smov %s1343_s20  ;;  %s1697_s20 = smov %s1422_s27 }
 0x2d4   : > { %s1698_s21 = smov %s1410_s24  ;;  %20 = sbr.rel (!%p18_p4) target bundleno = 5 (0x5), region = 85 }
 0x2db   :  { %1012 = vsyncpa [#allocation3], 1 }
 0x2dc   :  { %1014 = vsyncpa [#allocation3 + $0x1], 1 }
 0x2dd   :  { %1015 = vsyncpa [#allocation4], 1 }
 0x2de   :  { %1017 = vsyncpa [#allocation4 + $0x1], 1 }

</bundles_post_ra>
